<compile_context>
chip_gen: v6e
topology: v6e:2x2x1
jax: 0.10.0
libtpu: 0.0.40
codegen_flags: <defaults>
</compile_context>

<pallas_src>
import jax
import jax.numpy as jnp
from jax.experimental import pallas as pl
from jax.experimental.pallas import tpu as pltpu


IN_FEATURES = 768      # `in_features = 768` in the reference module
LINEAR_SIZE = 128      # `linear_size` ctor arg
NUM_CLASSES = 2
PAD_N = 128            # lane-dense logit slab width (multiple of 128)
BN_EPS = 1e-5
NEG_BIG = -1e30        # bias for padded logit lanes -> exp underflows to exactly 0


def head_kernel(x_ref, w_ref, b_ref, o_ref):
    """Fused eval-mode head: z = x @ W_eff + b_eff ; softmax over the class lanes.

    x_ref: [BT, IN_FEATURES]    bf16  (last-token GPT hidden states)
    w_ref: [IN_FEATURES, PAD_N] bf16  (linear1+BN1+linear2+BN2 folded, zero-padded)
    b_ref: [1, PAD_N]           f32   (folded bias; padded lanes = -1e30)
    o_ref: [BT, PAD_N]          f32   (softmax; only first NUM_CLASSES lanes are valid)
    """
    z = jnp.dot(x_ref[...], w_ref[...],
                preferred_element_type=jnp.float32) + b_ref[...]
    m = jnp.max(z, axis=-1, keepdims=True)
    e = jnp.exp(z - m)                                   # padded lanes -> 0
    inv = pl.reciprocal(jnp.sum(e, axis=-1, keepdims=True), approx=True)
    o_ref[...] = e * inv


def _round_up(n, m):
    return ((n + m - 1) // m) * m


def texsum_head_pallas(x, w_pad, b_pad, *, batch_block=512):
    """x: [B, IN_FEATURES] last-token hidden states -> [B, NUM_CLASSES] probabilities."""
    B = x.shape[0]
    bt = min(batch_block, _round_up(B, 8))       # sublane-aligned batch tile
    b_total = _round_up(B, bt)
    if b_total != B:
        x = jnp.pad(x, ((0, b_total - B), (0, 0)))
    x = x.astype(jnp.bfloat16)

    out = pl.pallas_call(
        head_kernel,
        out_shape=jax.ShapeDtypeStruct((b_total, PAD_N), jnp.float32),
        grid=(b_total // bt,),
        in_specs=[
            pl.BlockSpec((bt, IN_FEATURES), lambda i: (i, 0)),
            pl.BlockSpec((IN_FEATURES, PAD_N), lambda i: (0, 0)),   # weights resident
            pl.BlockSpec((1, PAD_N), lambda i: (0, 0)),
        ],
        out_specs=pl.BlockSpec((bt, PAD_N), lambda i: (i, 0)),
        compiler_params=pltpu.CompilerParams(
            dimension_semantics=("parallel",)),   # batch axis shards across v7x TCs
    )(x, w_pad, b_pad)

    return out[:B, :NUM_CLASSES]


def make_params(key):
    """Deterministic synthetic parameters matching the module's __init__ shapes."""
    ks = jax.random.split(key, 12)

    def uniform(k, shape, bound):
        return jax.random.uniform(k, shape, jnp.float32, -bound, bound)

    # linear1: torch.nn.Linear(768, LINEAR_SIZE); weight stored transposed [in, out].
    bound1 = 1.0 / (IN_FEATURES ** 0.5)
    w1 = uniform(ks[0], (IN_FEATURES, LINEAR_SIZE), bound1)
    b1 = uniform(ks[1], (LINEAR_SIZE,), bound1)
    # batch_norm1 affine + running stats
    g1 = 1.0 + 0.1 * jax.random.normal(ks[2], (LINEAR_SIZE,), jnp.float32)
    be1 = 0.1 * jax.random.normal(ks[3], (LINEAR_SIZE,), jnp.float32)
    rm1 = 0.1 * jax.random.normal(ks[4], (LINEAR_SIZE,), jnp.float32)
    rv1 = jax.random.uniform(ks[5], (LINEAR_SIZE,), jnp.float32, 0.5, 1.5)

    # linear2: torch.nn.Linear(LINEAR_SIZE, 2); weight stored transposed [in, out].
    bound2 = 1.0 / (LINEAR_SIZE ** 0.5)
    w2 = uniform(ks[6], (LINEAR_SIZE, NUM_CLASSES), bound2)
    b2 = uniform(ks[7], (NUM_CLASSES,), bound2)
    g2 = 1.0 + 0.1 * jax.random.normal(ks[8], (NUM_CLASSES,), jnp.float32)
    be2 = 0.1 * jax.random.normal(ks[9], (NUM_CLASSES,), jnp.float32)
    rm2 = 0.1 * jax.random.normal(ks[10], (NUM_CLASSES,), jnp.float32)
    rv2 = jax.random.uniform(ks[11], (NUM_CLASSES,), jnp.float32, 0.5, 1.5)

    return (w1, b1, g1, be1, rm1, rv1, w2, b2, g2, be2, rm2, rv2)


def fold_params(raw):
    """One-time fold of linear1+BN1(eval)+linear2+BN2(eval) into a single affine
    [768, NUM_CLASSES], then lane-pad to [768, PAD_N] (bf16 W, f32 bias)."""
    (w1, b1, g1, be1, rm1, rv1, w2, b2, g2, be2, rm2, rv2) = raw
    s1 = g1 / jnp.sqrt(rv1 + BN_EPS)
    t1 = be1 - rm1 * s1
    s2 = g2 / jnp.sqrt(rv2 + BN_EPS)
    t2 = be2 - rm2 * s2

    w1s = w1 * s1[None, :]                       # [768, L]
    w2s = w2 * s2[None, :]                       # [L, 2]
    w_eff = w1s @ w2s                            # [768, 2]
    b_eff = (b1 * s1 + t1) @ w2s + (b2 * s2 + t2)  # [2]

    w_pad = jnp.zeros((IN_FEATURES, PAD_N), jnp.float32).at[:, :NUM_CLASSES].set(w_eff)
    b_pad = jnp.full((1, PAD_N), NEG_BIG, jnp.float32).at[0, :NUM_CLASSES].set(b_eff)
    return w_pad.astype(jnp.bfloat16), b_pad


def reference_head(x, raw):
    """Pure-JAX f32 reference following the original module op-by-op (eval mode)."""
    (w1, b1, g1, be1, rm1, rv1, w2, b2, g2, be2, rm2, rv2) = raw
    h = x @ w1 + b1
    h = (h - rm1) / jnp.sqrt(rv1 + BN_EPS) * g1 + be1
    z = h @ w2 + b2
    z = (z - rm2) / jnp.sqrt(rv2 + BN_EPS) * g2 + be2
    return jax.nn.softmax(z, axis=1)


if __name__ == "__main__":
    key = jax.random.PRNGKey(0)
    k_hidden, k_params = jax.random.split(key)

    # Synthetic stand-in for gpt_output[0]: [batch, seq, in_features]
    B, S = 8, 8
    gpt_last_hidden = jax.random.normal(k_hidden, (B, S, IN_FEATURES), jnp.float32)

    # Glue: take the last token's hidden state, as in gpt_output[0][:, -1, :]
    x = gpt_last_hidden[:, -1, :]

    raw = make_params(k_params)
    w_pad, b_pad = fold_params(raw)   # one-time constant fold (not per forward)

    out = texsum_head_pallas(x, w_pad, b_pad)
    out = jax.block_until_ready(out)

    ref = reference_head(x, raw)
    assert out.shape == (B, NUM_CLASSES)
    # bf16 MXU inputs + approx reciprocal -> relaxed tolerances vs the f32 reference.
    assert jnp.allclose(out, ref, atol=2e-2, rtol=2e-2), "mismatch vs reference"
    assert jnp.allclose(jnp.sum(out, axis=1), 1.0, atol=1e-2), "softmax rows must sum to 1"

    print("KERNEL_OK")
</pallas_src>

<mosaic_0001>
module attributes {stable_mosaic.version = 11 : i64} {
  func.func @head_kernel(%arg0: i32, %arg1: memref<8x768xbf16, #tpu.memory_space<vmem>>, %arg2: memref<768x128xbf16, #tpu.memory_space<vmem>>, %arg3: memref<1x128xf32, #tpu.memory_space<vmem>>, %arg4: memref<8x128xf32, #tpu.memory_space<vmem>>) attributes {dimension_semantics = [#tpu.dimension_semantics<parallel>], iteration_bounds = array<i64: 1>, scalar_prefetch = 0 : i64, scratch_operands = 0 : i64, tpu.core_type = #tpu.core_type<tc>, window_params = [{transform_indices = @transform_0, window_bounds = array<i64: 8, 768>}, {pipeline_mode = #tpu.pipeline_mode<synchronous>, transform_indices = @transform_1, window_bounds = array<i64: 768, 128>}, {pipeline_mode = #tpu.pipeline_mode<synchronous>, transform_indices = @transform_2, window_bounds = array<i64: 1, 128>}, {transform_indices = @transform_3, window_bounds = array<i64: 8, 128>}]} {
    %c0 = arith.constant 0 : index
    %c0_0 = arith.constant 0 : index
    %0 = vector.load %arg1[%c0, %c0_0] : memref<8x768xbf16, #tpu.memory_space<vmem>>, vector<8x768xbf16>
    %c0_1 = arith.constant 0 : index
    %c0_2 = arith.constant 0 : index
    %1 = vector.load %arg2[%c0_1, %c0_2] : memref<768x128xbf16, #tpu.memory_space<vmem>>, vector<768x128xbf16>
    %cst = arith.constant dense<0.000000e+00> : vector<8x128xf32>
    %2 = tpu.matmul %0, %1, %cst {dimension_numbers = #tpu.dot_dimension_numbers<[1], [0], [0], [1], [0, 0, 1, 1], [], []>} : vector<8x768xbf16>, vector<768x128xbf16>, vector<8x128xf32> -> vector<8x128xf32>
    %c0_3 = arith.constant 0 : index
    %c0_4 = arith.constant 0 : index
    %3 = vector.load %arg3[%c0_3, %c0_4] : memref<1x128xf32, #tpu.memory_space<vmem>>, vector<1x128xf32>
    %4 = vector.broadcast %3 : vector<1x128xf32> to vector<8x128xf32>
    %5 = arith.addf %2, %4 : vector<8x128xf32>
    %cst_5 = arith.constant dense<0xFF800000> : vector<8xf32>
    %6 = vector.multi_reduction <maximumf>, %5, %cst_5 [1] : vector<8x128xf32> to vector<8xf32>
    %7 = vector.shape_cast %6 : vector<8xf32> to vector<8x1xf32>
    %8 = vector.broadcast %7 : vector<8x1xf32> to vector<8x128xf32>
    %9 = arith.subf %5, %8 : vector<8x128xf32>
    %10 = math.exp %9 : vector<8x128xf32>
    %cst_6 = arith.constant dense<0.000000e+00> : vector<8xf32>
    %11 = vector.multi_reduction <add>, %10, %cst_6 [1] : vector<8x128xf32> to vector<8xf32>
    %12 = vector.shape_cast %11 : vector<8xf32> to vector<8x1xf32>
    %13 = tpu.reciprocal %12 {approx = true} : vector<8x1xf32> -> vector<8x1xf32>
    %14 = vector.broadcast %13 : vector<8x1xf32> to vector<8x128xf32>
    %15 = arith.mulf %10, %14 : vector<8x128xf32>
    %c0_7 = arith.constant 0 : index
    %c0_8 = arith.constant 0 : index
    %16 = vector.load %arg4[%c0_7, %c0_8] : memref<8x128xf32, #tpu.memory_space<vmem>>, vector<8x128xf32>
    tpu.vector_store %arg4[%c0_7, %c0_8], %15 {strides = array<i32>} : memref<8x128xf32, #tpu.memory_space<vmem>>, vector<8x128xf32>,
    return
  }
  func.func @transform_0(%arg0: i32) -> (i32, i32) {
    %c0_i32 = arith.constant 0 : i32
    %c0_i32_0 = arith.constant 0 : i32
    return %arg0, %c0_i32 : i32, i32
  }
  func.func @transform_1(%arg0: i32) -> (i32, i32) {
    %c0_i32 = arith.constant 0 : i32
    %c0_i32_0 = arith.constant 0 : i32
    %c0_i32_1 = arith.constant 0 : i32
    return %c0_i32, %c0_i32_0 : i32, i32
  }
  func.func @transform_2(%arg0: i32) -> (i32, i32) {
    %c0_i32 = arith.constant 0 : i32
    %c0_i32_0 = arith.constant 0 : i32
    %c0_i32_1 = arith.constant 0 : i32
    return %c0_i32, %c0_i32_0 : i32, i32
  }
  func.func @transform_3(%arg0: i32) -> (i32, i32) {
    %c0_i32 = arith.constant 0 : i32
    %c0_i32_0 = arith.constant 0 : i32
    return %arg0, %c0_i32 : i32, i32
  }
}

</mosaic_0001>

<bundles_post_ra>
// kernel: tpu_custom_call.1
= control target key start
LH: loop header
LB: loop body
LE: loop exit
PB: predicated region body
PF: predicated region fallthrough
CT: control target
= control target key end

     0   :  { %8 = vsyncpa [#allocation3], 0  ;;  %s890_s0 = inlined_call_operand.hbm [shape: bf16[8,768], index: 0, kind: input, shape index: {}]   ;;  %s891_s1 = inlined_call_operand.hbm [shape: bf16[768,128], index: 1, kind: input, shape index: {}]   ;;  %s892_s2 = inlined_call_operand.vmem [shape: f32[1,128], index: 2, kind: input, shape index: {}]   ;;  %s893_s3 = inlined_call_operand.hbm [shape: f32[8,128], index: 3, kind: output, shape index: {}]  }
   0x1   :  { %9 = vsyncpa [#allocation6], 0 }
   0x2   :  { %10 = vsyncpa [#allocation4], 0  ;;  %s853_s12 = smov [#allocation2]   ;;  %s854_s14 = smov [#allocation5]  }
   0x3   :  { %s17_s13 = sshll.u32 %s853_s12, 4  ;;  %s26_s15 = sshll.u32 %s854_s14, 4  ;;  %s18_s13 = int_to_ptr.vmem [resolvable:$true] %s17_s13  ;;  %s27_s15 = int_to_ptr.vmem [resolvable:$true] %s26_s15 }
   0x4   :  { %s795_s16 = scalar_lea.vmem %s18_s13, 384  ;;  %p800_p1 = scmp.lt.s32.totalorder %s18_s13, %s18_s13 }
   0x5   :  { %p796_p0 = scmp.ne.s32.totalorder %s18_s13, %s795_s16  ;;  %p801_p2 = scmp.lt.s32.totalorder %s795_s16, %s795_s16 }
   0x7   :  { %p802_p3 = por %p801_p2, %p800_p1 }
   0x9   :  { %p803_p4 = pnand %p802_p3, %p796_p0 }
   0xb   :  { %806 = shalt.err (!%p803_p4)
}
   0xc   :  { %20 = dma.hbm_to_vmem [thread:$0]  %s890_s0, 384, %s18_s13, [#allocation3]  }
   0xd   :  { %s815_s19 = scalar_lea.vmem %s27_s15, 6144  ;;  %p820_p6 = scmp.lt.s32.totalorder %s27_s15, %s27_s15 }
   0xe   :  { %p816_p5 = scmp.ne.s32.totalorder %s27_s15, %s815_s19  ;;  %p821_p7 = scmp.lt.s32.totalorder %s815_s19, %s815_s19 }
  0x10   :  { %p822_p8 = por %p821_p7, %p820_p6 }
  0x12   :  { %p823_p9 = pnand %p822_p8, %p816_p5 }
  0x14   :  { %826 = shalt.err (!%p823_p9)
}
  0x15   :  { %s855_s20 = smov 64   ;;  %s856_s21 = smov 4  }
  0x16   :  { %32 = dma.hbm_to_vmem [thread:$0]  %s891_s1, 6144, %s27_s15, [#allocation6], %s855_s20, %s855_s20, %s856_s21  }
  0x17   :  { %847 = dma.done.wait [#allocation3], 384  }
  0x18   :  { %848 = vsyncadd [#allocation3], 4294966912 }
  0x19   :  { %849 = dma.done.wait [#allocation6], 6144  }
  0x1a   :  { %850 = vsyncadd [#allocation6], 4294961152  ;;  %v729_v0 = vld [vmem:[#allocation5 + $0x78] sm:$0xff]   ;;  %v733_v4 = vld [vmem:[#allocation5 + $0x70] sm:$0xff]   ;;  %s857_s24 = smov [#allocation7]  }
  0x1b   :  { %v730_v1 = vld [vmem:[#allocation5 + $0x38] sm:$0xff]   ;;  %658 = vmatprep.subr.bf16.mxu0 %v729_v0  ;;  %v734_v5 = vld [vmem:[#allocation5 + $0x30] sm:$0xff]   ;;  %v737_v8 = vld [vmem:[#allocation5 + $0x68] sm:$0xff]  }
  0x1c   :  { %v731_v2 = vld [vmem:[#allocation5 + $0xf8] sm:$0xff]   ;;  %659 = vmatpush3.bf16.msra.mxu0 %v730_v1  ;;  %v735_v6 = vld [vmem:[#allocation5 + $0xf0] sm:$0xff]   ;;  %v738_v9 = vld [vmem:[#allocation5 + $0x28] sm:$0xff]  }
  0x1d   :  { %v732_v3 = vld [vmem:[#allocation5 + $0xb8] sm:$0xff]   ;;  %680 = vmatprep.subr.bf16.mxu1 %v731_v2  ;;  %660 = vmatprep.subr.bf16.mxu0 %v733_v4  ;;  %v736_v7 = vld [vmem:[#allocation5 + $0xb0] sm:$0xff]   ;;  %v739_v10 = vld [vmem:[#allocation5 + $0xe8] sm:$0xff]  }
  0x1e   :  { %681 = vmatpush3.bf16.msra.mxu1 %v732_v3  ;;  %v740_v11 = vld [vmem:[#allocation5 + $0xa8] sm:$0xff]   ;;  %v741_v12 = vld [vmem:[#allocation5 + $0x60] sm:$0xff]   ;;  %v745_v16 = vld [vmem:[#allocation5 + $0x58] sm:$0xff]  }
  0x1f   :  { %682 = vmatprep.subr.bf16.mxu1 %v735_v6  ;;  %v742_v13 = vld [vmem:[#allocation5 + $0x20] sm:$0xff]   ;;  %v746_v17 = vld [vmem:[#allocation5 + $0x18] sm:$0xff]   ;;  %v749_v20 = vld [vmem:[#allocation5 + $0x50] sm:$0xff]  }
  0x20   :  { %661 = vmatpush3.bf16.msra.mxu0 %v734_v5  ;;  %v743_v14 = vld [vmem:[#allocation5 + $0xe0] sm:$0xff]   ;;  %v747_v18 = vld [vmem:[#allocation5 + $0xd8] sm:$0xff]   ;;  %v750_v21 = vld [vmem:[#allocation5 + $0x10] sm:$0xff]  }
  0x21   :  { %662 = vmatprep.subr.bf16.mxu0 %v737_v8  ;;  %v744_v15 = vld [vmem:[#allocation5 + $0xa0] sm:$0xff]   ;;  %v748_v19 = vld [vmem:[#allocation5 + $0x98] sm:$0xff]   ;;  %v751_v22 = vld [vmem:[#allocation5 + $0xd0] sm:$0xff]  }
  0x22   :  { %683 = vmatpush3.bf16.msra.mxu1 %v736_v7  ;;  %v752_v23 = vld [vmem:[#allocation5 + $0x90] sm:$0xff]   ;;  %v753_v24 = vld [vmem:[#allocation5 + $0x48] sm:$0xff]   ;;  %v757_v28 = vld [vmem:[#allocation5 + $0x40] sm:$0xff]  }
  0x23   :  { %684 = vmatprep.subr.bf16.mxu1 %v739_v10  ;;  %v754_v25 = vld [vmem:[#allocation5 + $0x8] sm:$0xff]   ;;  %v758_v29 = vld [vmem:[#allocation5] sm:$0xff]   ;;  %v763_v35 = vld [vmem:[#allocation5 + $0x178] sm:$0xff]  }
  0x24   :  { %663 = vmatpush3.bf16.msra.mxu0 %v738_v9  ;;  %v755_v26 = vld [vmem:[#allocation5 + $0xc8] sm:$0xff]   ;;  %v759_v30 = vld [vmem:[#allocation5 + $0xc0] sm:$0xff]   ;;  %v43_v36 = vld [vmem:[#allocation2 + $0x8] sm:$0xff] }
  0x25   :  { %664 = vmatprep.subr.bf16.mxu0 %v741_v12  ;;  %v756_v27 = vld [vmem:[#allocation5 + $0x88] sm:$0xff]   ;;  %v762_v34 = vld [vmem:[#allocation5 + $0x80] sm:$0xff]   ;;  %v606_v37 = vcombine.low %v43_v36, %v43_v36  ;;  %v607_v38 = vcombine.high %v43_v36, %v43_v36  ;;  %v766_v39 = vld [vmem:[#allocation5 + $0x138] sm:$0xff]  }
  0x26   :  { %685 = vmatpush3.bf16.msra.mxu1 %v740_v11  ;;  %v42_v31 = vld [vmem:[#allocation2] sm:$0xff]  ;;  %v767_v40 = vld [vmem:[#allocation5 + $0x170] sm:$0xff]   ;;  %v771_v44 = vld [vmem:[#allocation5 + $0x160] sm:$0xff]  }
  0x27   :  { %686 = vmatprep.subr.bf16.mxu1 %v743_v14  ;;  %v604_v32 = vcombine.low %v42_v31, %v42_v31  ;;  %v605_v33 = vcombine.high %v42_v31, %v42_v31  ;;  %529 = vmatprep.mubr.bf16.mxu1 %v607_v38  ;;  %v768_v41 = vld [vmem:[#allocation5 + $0x130] sm:$0xff]   ;;  %v769_v42 = vld [vmem:[#allocation5 + $0x168] sm:$0xff]   ;;  %v772_v45 = vld [vmem:[#allocation5 + $0x120] sm:$0xff]  }
  0x28   :  { %665 = vmatpush3.bf16.msra.mxu0 %v742_v13  ;;  %v770_v43 = vld [vmem:[#allocation5 + $0x128] sm:$0xff]   ;;  %v773_v46 = vld [vmem:[#allocation5 + $0x158] sm:$0xff]   ;;  %v775_v49 = vld [vmem:[#allocation5 + $0x150] sm:$0xff]  }
  0x29   :  { %666 = vmatprep.subr.bf16.mxu0 %v745_v16  ;;  %489 = vmatprep.mubr.bf16.mxu0 %v605_v33  ;;  %v774_v47 = vld [vmem:[#allocation5 + $0x118] sm:$0xff]   ;;  %v776_v51 = vld [vmem:[#allocation5 + $0x110] sm:$0xff]   ;;  %v777_v52 = vld [vmem:[#allocation5 + $0x148] sm:$0xff]  }
  0x2a   :  { %687 = vmatpush3.bf16.msra.mxu1 %v744_v15  ;;  %v44_v48 = vld [vmem:[#allocation2 + $0x10] sm:$0xff]  ;;  %v778_v53 = vld [vmem:[#allocation5 + $0x108] sm:$0xff]   ;;  %v779_v54 = vld [vmem:[#allocation5 + $0x140] sm:$0xff]  }
  0x2b   :  { %688 = vmatprep.subr.bf16.mxu1 %v747_v18  ;;  %v609_v50 = vcombine.high %v44_v48, %v44_v48  ;;  %v780_v55 = vld [vmem:[#allocation5 + $0x100] sm:$0xff]   ;;  %v608_v56 = vcombine.low %v44_v48, %v44_v48  ;;  %v603_v2 = vld [vmem:[%s892_s2] ss:$0 sm:$0xff]  ;;  %s593_s2 = sshll.u32 %s857_s24, 4  ;;  %s594_s2 = int_to_ptr.vmem [resolvable:$true] %s593_s2 }
  0x2c   :  { %667 = vmatpush3.bf16.msra.mxu0 %v746_v17  ;;  %s827_s25 = scalar_lea.vmem %s594_s2, 128  ;;  %p832_p11 = scmp.lt.s32.totalorder %s594_s2, %s594_s2 }
  0x2d   :  { %668 = vmatprep.subr.bf16.mxu0 %v749_v20  ;;  %p828_p10 = scmp.ne.s32.totalorder %s594_s2, %s827_s25  ;;  %p833_p12 = scmp.lt.s32.totalorder %s827_s25, %s827_s25 }
  0x2e   :  { %689 = vmatpush3.bf16.msra.mxu1 %v748_v19 }
  0x2f   :  { %690 = vmatprep.subr.bf16.mxu1 %v751_v22  ;;  %p834_p13 = por %p833_p12, %p832_p11 }
  0x30   :  { %669 = vmatpush3.bf16.msra.mxu0 %v750_v21 }
  0x31   :  { %670 = vmatprep.subr.bf16.mxu0 %v753_v24  ;;  %p835_p0 = pnand %p834_p13, %p828_p10 }
  0x32   :  { %691 = vmatpush3.bf16.msra.mxu1 %v752_v23 }
  0x33   :  { %692 = vmatprep.subr.bf16.mxu1 %v755_v26 }
  0x34   :  { %671 = vmatpush3.bf16.msra.mxu0 %v754_v25 }
  0x35   :  { %672 = vmatprep.subr.bf16.mxu0 %v757_v28 }
  0x36   :  { %693 = vmatpush3.bf16.msra.mxu1 %v756_v27 }
  0x37   :  { %694 = vmatprep.subr.bf16.mxu1 %v759_v30 }
  0x38   :  { %673 = vmatpush3.bf16.msra.mxu0 %v758_v29 }
  0x39   :  { %702 = vmatprep.subr.bf16.mxu0 %v763_v35 }
  0x3a   :  { %695 = vmatpush3.bf16.msra.mxu1 %v762_v34 }
  0x3b   :  { %490 = vmatmul.mubr.bf16.vlgmr.msra.gmra.mxu0 %v604_v32 }
  0x3c   :  { %703 = vmatpush3.bf16.msra.mxu0 %v766_v39  ;;  %569 = vmatprep.mubr.bf16.mxu0 %v609_v50 }
  0x3d   :  { %530 = vmatmul.mubr.bf16.vlgmr.msra.gmra.mxu1 %v606_v37  ;;  %704 = vmatprep.subr.bf16.mxu0 %v767_v40 }
  0x40   :  { %705 = vmatpush3.bf16.msra.mxu0 %v768_v41 }
  0x41   :  { %706 = vmatprep.subr.bf16.mxu0 %v769_v42 }
  0x44   :  { %707 = vmatpush3.bf16.msra.mxu0 %v770_v43 }
  0x45   :  { %708 = vmatprep.subr.bf16.mxu0 %v771_v44 }
  0x48   :  { %709 = vmatpush3.bf16.msra.mxu0 %v772_v45 }
  0x49   :  { %710 = vmatprep.subr.bf16.mxu0 %v773_v46 }
  0x4c   :  { %711 = vmatpush3.bf16.msra.mxu0 %v774_v47 }
  0x4d   :  { %712 = vmatprep.subr.bf16.mxu0 %v775_v49 }
  0x50   :  { %713 = vmatpush3.bf16.msra.mxu0 %v776_v51 }
  0x51   :  { %714 = vmatprep.subr.bf16.mxu0 %v777_v52 }
  0x54   :  { %715 = vmatpush3.bf16.msra.mxu0 %v778_v53 }
  0x55   :  { %716 = vmatprep.subr.bf16.mxu0 %v779_v54 }
  0x58   :  { %717 = vmatpush3.bf16.msra.mxu0 %v780_v55 }
  0x5b   :  { %570 = vmatmul.mubr.bf16.vlgmr.msra.gmra.mxu0 %v608_v56 }
  0xfb   :  { %v674_v57 = vpop.f32.mrf.mxu0 }
  0xfd   :  { %v675_v58 = vpop.f32.mrf.mxu0  ;;  %v696_v59 = vpop.f32.mrf.mxu1 }
  0xfe   :  { %v676_v1 = vadd.f32 %v675_v58, %v674_v57 }
  0xff   :  { %v677_v60 = vpop.f32.mrf.mxu0  ;;  %v697_v61 = vpop.f32.mrf.mxu1 }
 0x100   :  { %v492_v3 = vadd.f32 %v676_v1, %v603_v2  ;;  %v698_v4 = vadd.f32 %v697_v61, %v696_v59 }
 0x101   :  { %v678_v62 = vpop.f32.mrf.mxu0  ;;  %v699_v63 = vpop.f32.mrf.mxu1 }
 0x102   :  { %v532_v7 = vadd.f32 %v698_v4, %v492_v3 }
 0x103   :  { %v700_v0 = vpop.f32.mrf.mxu1 }
 0x11b   :  { %v718_v5 = vpop.f32.mrf.mxu0 }
 0x11d   :  { %v719_v6 = vpop.f32.mrf.mxu0 }
 0x11e   :  { %v720_v8 = vadd.f32 %v719_v6, %v718_v5 }
 0x11f   :  { %v721_v9 = vpop.f32.mrf.mxu0 }
 0x120   :  { %v572_v10 = vadd.f32 %v720_v8, %v532_v7 }
 0x121   :  { %v722_v11 = vpop.f32.mrf.mxu0 }
 0x122   :  { %577 = vmax.xlane.f32.xlu0 %v572_v10 }
 0x1ab   :  { %v578_v12 = vpop.xlane.xlu0 %577 }
 0x1ac   :  { %v579_v13 = vsub.f32 %v572_v10, %v578_v12 }
 0x1ae   :  { %v580_v14 = vmul.f32 1.442695, %v579_v13 }
 0x1b0   :  { %783 = vpow2.f32 %v580_v14 }
 0x1bd   :  { %v784_v15 = vpop.eup %783 }
 0x1be   :  { %582 = vadd.xlane.f32.xlu0 %v784_v15 }
 0x247   :  { %v583_v16 = vpop.xlane.xlu0 %582 }
 0x248   :  { %785 = vrcp.f32 %v583_v16 }
 0x255   :  { %v786_v17 = vpop.eup %785 }
 0x256   :  { %v585_v18 = vmul.f32 %v786_v17, %v784_v15 }
 0x258   :  { %586 = vst [vmem:[#allocation7] sm:$0xff] %v585_v18 }
 0x259   :  { %838 = shalt.err (!%p835_p0)
}
 0x25a   :  { %596 = dma.vmem_to_hbm [thread:$0]  %s594_s2, 128, %s893_s3, [#allocation4]  }
 0x25b   :  { %851 = dma.done.wait [#allocation4], 128  }
 0x25c   :  { %852 = vsyncadd [#allocation4], 4294967168 }
 0x25d   :  { %600 = vsyncpa [#allocation3], 1 }
 0x25e   :  { %601 = vsyncpa [#allocation6], 1 }
 0x25f   :  { %602 = vsyncpa [#allocation4], 1 }

</bundles_post_ra>
